<compile_context>
chip_gen: v7x
topology: tpu7x:2x2x1
jax: 0.10.0
libtpu: 0.0.40
codegen_flags: <defaults>
</compile_context>

<pallas_src>
import jax
import jax.numpy as jnp
from jax.experimental import pallas as pl
from jax.experimental.pallas import tpu as pltpu  # noqa: F401  (kept for future tiling work)


def _round_up(x, m):
    return ((x + m - 1) // m) * m


# ----------------------------------------------------------------------------
# Fused kernel: normalize -> edge encoder -> (implicit) concat -> 2 x relu((A@X)@W)
# ----------------------------------------------------------------------------
def _mymodel9_fused_kernel(af_ref, encw_ref, ef_ref, w_ref, o_ref):
    n = af_ref.shape[1]          # number of nodes
    e = ef_ref.shape[1]          # number of edges
    d = n + e                    # real feature dim after concat

    # normalize(): scale row i by rowsum_i ** 0.5 (spec uses the +0.5 exponent; the
    # isinf->0 guard is kept verbatim from the reference).
    def _normalize(m):
        r = jnp.sqrt(jnp.sum(m, axis=1, keepdims=True))
        r = jnp.where(jnp.isinf(r), 0.0, r)
        return r * m

    a_n = _normalize(af_ref[0])
    f_n = _normalize(af_ref[1])

    # Edge encoder with the bias folded in as an extra column/row:
    #   relu([W_enc | b] @ [edge_F ; 1]) == relu(W_enc @ edge_F + b[:, None])  -> (N, E)
    edge_attr = jnp.maximum(
        jnp.dot(encw_ref[...], ef_ref[...], preferred_element_type=jnp.float32), 0.0)

    w1 = w_ref[0]                # (D, D_pad): real W1 in the first D lanes, zeros after
    w2 = w_ref[1]

    # Hop 1, with the concat distributed over W1's row blocks (the concatenated
    # [F_n | edge_attr | 0] matrix is never built):
    #   relu((A_n @ [F_n | edge_attr]) @ W1)
    #     == relu((A_n @ F_n) @ W1[:N] + (A_n @ edge_attr) @ W1[N:D])
    af_part = jnp.dot(a_n, f_n, preferred_element_type=jnp.float32)
    ae_part = jnp.dot(a_n, edge_attr, preferred_element_type=jnp.float32)
    h1 = (jnp.dot(af_part, w1[:n, :], preferred_element_type=jnp.float32)
          + jnp.dot(ae_part, w1[n:, :], preferred_element_type=jnp.float32))
    x = jnp.maximum(h1, 0.0)     # (N, D_pad); lanes >= D are exactly 0

    # Hop 2: padded lanes of x are exactly zero, so contract only over the first D
    # columns (W2 is shipped without zero K-rows).
    ax = jnp.dot(a_n, x, preferred_element_type=jnp.float32)
    h2 = jnp.dot(ax[:, :d], w2, preferred_element_type=jnp.float32)

    # Single lane-dense store of the final hop state.
    o_ref[...] = jnp.maximum(h2, 0.0)

    # TODO(synk): once N / E grow, cast the dot operands to bfloat16 (keep f32 MXU
    # accumulation) and add a real (tm, tk) grid: 256-aligned tiles with the row axis
    # marked "parallel" on v6e/v7x (re-derive tile sizes for v7x's 64 MiB VMEM and set
    # vmem_limit_bytes), 128-aligned tiles on v5e. At N=16 one VMEM block is optimal.


# ----------------------------------------------------------------------------
# One-time parameter preparation (kept OUT of the jitted forward).
# ----------------------------------------------------------------------------
def prepare_params(params, N, E):
    D = N + E
    D_pad = _round_up(D, 128)
    # Pack the two hop weights; pad only the output-lane dimension.
    W = jnp.zeros((2, D, D_pad), jnp.float32)
    W = W.at[0, :, :D].set(params["W1"].astype(jnp.float32))
    W = W.at[1, :, :D].set(params["W2"].astype(jnp.float32))
    # Fold the encoder bias in as an extra column: [W_enc | b]  -> (N, F_in + 1)
    enc_w_aug = jnp.concatenate(
        [params["enc_w"].astype(jnp.float32),
         params["enc_b"].astype(jnp.float32)[:, None]], axis=-1)
    return {"W": W, "enc_w_aug": enc_w_aug}


# ----------------------------------------------------------------------------
# Host wrapper
# ----------------------------------------------------------------------------
@jax.jit
def mymodel9_forward(A, F, edge_F, prepped):
    """A: (N,N), F: (N,N), edge_F: (F_in, E). Returns (N, N+E) float32."""
    N = A.shape[0]
    E = edge_F.shape[1]
    D = N + E
    D_pad = prepped["W"].shape[-1]

    # Pack A and F into one DMA; append the ones-row that carries the encoder bias.
    af = jnp.stack([A.astype(jnp.float32), F.astype(jnp.float32)], axis=0)      # (2,N,N)
    ef_aug = jnp.concatenate(
        [edge_F.astype(jnp.float32), jnp.ones((1, E), jnp.float32)], axis=0)    # (F_in+1,E)

    def full(shape):
        return pl.BlockSpec(shape, lambda: (0,) * len(shape))

    out_padded = pl.pallas_call(
        _mymodel9_fused_kernel,
        out_shape=jax.ShapeDtypeStruct((N, D_pad), jnp.float32),
        in_specs=[
            full(af.shape),                    # packed [A; F]     (2, N, N)
            full(prepped["enc_w_aug"].shape),  # [enc_w | enc_b]   (N, F_in+1)
            full(ef_aug.shape),                # [edge_F ; 1]      (F_in+1, E)
            full(prepped["W"].shape),          # packed [W1; W2]   (2, D, D_pad)
        ],
        out_specs=full((N, D_pad)),
    )(af, prepped["enc_w_aug"], ef_aug, prepped["W"])

    return out_padded[:, :D]


# ----------------------------------------------------------------------------
# Deterministic parameter construction matching the PyTorch module's init.
# ----------------------------------------------------------------------------
def xavier_uniform(key, shape):
    fan_in, fan_out = shape
    bound = jnp.sqrt(6.0 / (fan_in + fan_out))
    return jax.random.uniform(key, shape, jnp.float32, minval=-bound, maxval=bound)


if __name__ == "__main__":
    key = jax.random.PRNGKey(0)
    kA, kF, kE, kW, kB, k1, k2 = jax.random.split(key, 7)

    N = 16        # number of nodes: A, F are (N, N)
    E = 16        # number of edges (columns of edge_F)
    F_in = 8      # edge feature dim = len(edge_F)
    D = N + E     # feature dim after concat

    # Deterministic synthetic inputs (non-negative so normalize() is well-posed).
    A = jax.random.uniform(kA, (N, N), jnp.float32)
    F = jax.random.uniform(kF, (N, N), jnp.float32)
    edge_F = jax.random.uniform(kE, (F_in, E), jnp.float32)

    # Deterministic parameters:
    #  - edge_encoder: torch.nn.Linear(F_in, N) default init U(-1/sqrt(F_in), 1/sqrt(F_in))
    #  - W1, W2: xavier_uniform, (D, D)   (fresh weight per hop, as in AFWlayer())
    lim = 1.0 / jnp.sqrt(jnp.float32(F_in))
    params = {
        "enc_w": jax.random.uniform(kW, (N, F_in), jnp.float32, minval=-lim, maxval=lim),
        "enc_b": jax.random.uniform(kB, (N,), jnp.float32, minval=-lim, maxval=lim),
        "W1": xavier_uniform(k1, (D, D)),
        "W2": xavier_uniform(k2, (D, D)),
    }

    prepped = prepare_params(params, N, E)
    out = mymodel9_forward(A, F, edge_F, prepped)
    jax.block_until_ready(out)
    assert out.shape == (N, D) and out.dtype == jnp.float32
    print("KERNEL_OK")
</pallas_src>

<mosaic_0001>
module attributes {stable_mosaic.version = 11 : i64} {
  func.func @_mymodel9_fused_kernel(%arg0: memref<2x16x16xf32, #tpu.memory_space<vmem>>, %arg1: memref<16x9xf32, #tpu.memory_space<vmem>>, %arg2: memref<9x16xf32, #tpu.memory_space<vmem>>, %arg3: memref<2x32x128xf32, #tpu.memory_space<vmem>>, %arg4: memref<16x128xf32, #tpu.memory_space<vmem>>) attributes {dimension_semantics = [], scalar_prefetch = 0 : i64, scratch_operands = 0 : i64, tpu.core_type = #tpu.core_type<tc>} {
    %c0 = arith.constant 0 : index
    %c0_0 = arith.constant 0 : index
    %c0_1 = arith.constant 0 : index
    %0 = vector.load %arg0[%c0, %c0_0, %c0_1] : memref<2x16x16xf32, #tpu.memory_space<vmem>>, vector<1x16x16xf32>
    %1 = vector.shape_cast %0 : vector<1x16x16xf32> to vector<16x16xf32>
    %cst = arith.constant dense<0.000000e+00> : vector<16xf32>
    %2 = vector.multi_reduction <add>, %1, %cst [1] : vector<16x16xf32> to vector<16xf32>
    %3 = vector.shape_cast %2 : vector<16xf32> to vector<16x1xf32>
    %4 = math.sqrt %3 : vector<16x1xf32>
    %5 = math.absf %4 : vector<16x1xf32>
    %cst_2 = arith.constant 0x7F800000 : f32
    %6 = vector.broadcast %cst_2 : f32 to vector<16x1xf32>
    %7 = arith.cmpf oeq, %5, %6 : vector<16x1xf32>
    %cst_3 = arith.constant 0.000000e+00 : f32
    %8 = vector.broadcast %cst_3 : f32 to vector<16x1xf32>
    %9 = arith.select %7, %8, %4 : vector<16x1xi1>, vector<16x1xf32>
    %10 = vector.broadcast %9 : vector<16x1xf32> to vector<16x16xf32>
    %11 = arith.mulf %10, %1 : vector<16x16xf32>
    %c1 = arith.constant 1 : index
    %c0_4 = arith.constant 0 : index
    %c0_5 = arith.constant 0 : index
    %12 = vector.load %arg0[%c1, %c0_4, %c0_5] : memref<2x16x16xf32, #tpu.memory_space<vmem>>, vector<1x16x16xf32>
    %13 = vector.shape_cast %12 : vector<1x16x16xf32> to vector<16x16xf32>
    %cst_6 = arith.constant dense<0.000000e+00> : vector<16xf32>
    %14 = vector.multi_reduction <add>, %13, %cst_6 [1] : vector<16x16xf32> to vector<16xf32>
    %15 = vector.shape_cast %14 : vector<16xf32> to vector<16x1xf32>
    %16 = math.sqrt %15 : vector<16x1xf32>
    %17 = math.absf %16 : vector<16x1xf32>
    %cst_7 = arith.constant 0x7F800000 : f32
    %18 = vector.broadcast %cst_7 : f32 to vector<16x1xf32>
    %19 = arith.cmpf oeq, %17, %18 : vector<16x1xf32>
    %cst_8 = arith.constant 0.000000e+00 : f32
    %20 = vector.broadcast %cst_8 : f32 to vector<16x1xf32>
    %21 = arith.select %19, %20, %16 : vector<16x1xi1>, vector<16x1xf32>
    %22 = vector.broadcast %21 : vector<16x1xf32> to vector<16x16xf32>
    %23 = arith.mulf %22, %13 : vector<16x16xf32>
    %c0_9 = arith.constant 0 : index
    %c0_10 = arith.constant 0 : index
    %24 = vector.load %arg1[%c0_9, %c0_10] : memref<16x9xf32, #tpu.memory_space<vmem>>, vector<16x9xf32>
    %c0_11 = arith.constant 0 : index
    %c0_12 = arith.constant 0 : index
    %25 = vector.load %arg2[%c0_11, %c0_12] : memref<9x16xf32, #tpu.memory_space<vmem>>, vector<9x16xf32>
    %cst_13 = arith.constant dense<0.000000e+00> : vector<16x16xf32>
    %26 = tpu.matmul %24, %25, %cst_13 {dimension_numbers = #tpu.dot_dimension_numbers<[1], [0], [0], [1], [0, 0, 1, 1], [], []>} : vector<16x9xf32>, vector<9x16xf32>, vector<16x16xf32> -> vector<16x16xf32>
    %cst_14 = arith.constant 0.000000e+00 : f32
    %27 = vector.broadcast %cst_14 : f32 to vector<16x16xf32>
    %28 = arith.maximumf %26, %27 : vector<16x16xf32>
    %c0_15 = arith.constant 0 : index
    %c0_16 = arith.constant 0 : index
    %c0_17 = arith.constant 0 : index
    %29 = vector.load %arg3[%c0_15, %c0_16, %c0_17] : memref<2x32x128xf32, #tpu.memory_space<vmem>>, vector<1x32x128xf32>
    %30 = vector.shape_cast %29 : vector<1x32x128xf32> to vector<32x128xf32>
    %c1_18 = arith.constant 1 : index
    %c0_19 = arith.constant 0 : index
    %c0_20 = arith.constant 0 : index
    %31 = vector.load %arg3[%c1_18, %c0_19, %c0_20] : memref<2x32x128xf32, #tpu.memory_space<vmem>>, vector<1x32x128xf32>
    %32 = vector.shape_cast %31 : vector<1x32x128xf32> to vector<32x128xf32>
    %cst_21 = arith.constant dense<0.000000e+00> : vector<16x16xf32>
    %33 = tpu.matmul %11, %23, %cst_21 {dimension_numbers = #tpu.dot_dimension_numbers<[1], [0], [0], [1], [0, 0, 1, 1], [], []>} : vector<16x16xf32>, vector<16x16xf32>, vector<16x16xf32> -> vector<16x16xf32>
    %cst_22 = arith.constant dense<0.000000e+00> : vector<16x16xf32>
    %34 = tpu.matmul %11, %28, %cst_22 {dimension_numbers = #tpu.dot_dimension_numbers<[1], [0], [0], [1], [0, 0, 1, 1], [], []>} : vector<16x16xf32>, vector<16x16xf32>, vector<16x16xf32> -> vector<16x16xf32>
    %35 = vector.extract_strided_slice %30 {offsets = [0, 0], sizes = [16, 128], strides = [1, 1]} : vector<32x128xf32> to vector<16x128xf32>
    %cst_23 = arith.constant dense<0.000000e+00> : vector<16x128xf32>
    %36 = tpu.matmul %33, %35, %cst_23 {dimension_numbers = #tpu.dot_dimension_numbers<[1], [0], [0], [1], [0, 0, 1, 1], [], []>} : vector<16x16xf32>, vector<16x128xf32>, vector<16x128xf32> -> vector<16x128xf32>
    %37 = vector.extract_strided_slice %30 {offsets = [16, 0], sizes = [16, 128], strides = [1, 1]} : vector<32x128xf32> to vector<16x128xf32>
    %cst_24 = arith.constant dense<0.000000e+00> : vector<16x128xf32>
    %38 = tpu.matmul %34, %37, %cst_24 {dimension_numbers = #tpu.dot_dimension_numbers<[1], [0], [0], [1], [0, 0, 1, 1], [], []>} : vector<16x16xf32>, vector<16x128xf32>, vector<16x128xf32> -> vector<16x128xf32>
    %39 = arith.addf %36, %38 : vector<16x128xf32>
    %cst_25 = arith.constant 0.000000e+00 : f32
    %40 = vector.broadcast %cst_25 : f32 to vector<16x128xf32>
    %41 = arith.maximumf %39, %40 : vector<16x128xf32>
    %cst_26 = arith.constant dense<0.000000e+00> : vector<16x128xf32>
    %42 = tpu.matmul %11, %41, %cst_26 {dimension_numbers = #tpu.dot_dimension_numbers<[1], [0], [0], [1], [0, 0, 1, 1], [], []>} : vector<16x16xf32>, vector<16x128xf32>, vector<16x128xf32> -> vector<16x128xf32>
    %43 = vector.extract_strided_slice %42 {offsets = [0, 0], sizes = [16, 32], strides = [1, 1]} : vector<16x128xf32> to vector<16x32xf32>
    %cst_27 = arith.constant dense<0.000000e+00> : vector<16x128xf32>
    %44 = tpu.matmul %43, %32, %cst_27 {dimension_numbers = #tpu.dot_dimension_numbers<[1], [0], [0], [1], [0, 0, 1, 1], [], []>} : vector<16x32xf32>, vector<32x128xf32>, vector<16x128xf32> -> vector<16x128xf32>
    %cst_28 = arith.constant 0.000000e+00 : f32
    %45 = vector.broadcast %cst_28 : f32 to vector<16x128xf32>
    %46 = arith.maximumf %44, %45 : vector<16x128xf32>
    %c0_29 = arith.constant 0 : index
    %c0_30 = arith.constant 0 : index
    %47 = vector.load %arg4[%c0_29, %c0_30] : memref<16x128xf32, #tpu.memory_space<vmem>>, vector<16x128xf32>
    tpu.vector_store %arg4[%c0_29, %c0_30], %46 {strides = array<i32>} : memref<16x128xf32, #tpu.memory_space<vmem>>, vector<16x128xf32>,
    return
  }
}

</mosaic_0001>

<bundles_post_ra>
// kernel: mymodel9_forward.1
= control target key start
LH: loop header
LB: loop body
LE: loop exit
PB: predicated region body
PF: predicated region fallthrough
CT: control target
= control target key end

     0   :  { %vm91_vm0 = vcmask 1040384   ;;  %vm854_vm1 = vmmov 1   ;;  %vm84_vm3 = vcmask 72704   ;;  %vm20_vm4 = vcmask 130048   ;;  %s973_s0 = inlined_call_operand.vmem [shape: f32[2,16,16], index: 0, kind: input, shape index: {}]   ;;  %s974_s1 = inlined_call_operand.vmem [shape: f32[16,9], index: 1, kind: input, shape index: {}]   ;;  %s975_s2 = inlined_call_operand.vmem [shape: f32[9,16], index: 2, kind: input, shape index: {}]   ;;  %s976_s3 = inlined_call_operand.vmem [shape: f32[2,32,128], index: 3, kind: input, shape index: {}]   ;;  %s977_s4 = inlined_call_operand.hbm [shape: f32[16,128], index: 4, kind: output, shape index: {}]  }
   0x1   :  { %v82_v0 = vld [vmem:[%s975_s2] sm:$0xff]  ;;  %v83_v1 = vld [vmem:[%s975_s2 + $0x8] sm:$0x1]  ;;  %vm783_vm2 = vmpackc.low %vm91_vm0, %vm854_vm1 }
   0x2   :  { %v80_v2 = vld [vmem:[%s974_s1] sm:$0xff]  ;;  %v782_v3 = vpack.c.bf16 %v83_v1, %v82_v0  ;;  %v895_v4 = vld [vmem:[%s973_s0 + $0x10] sm:$0xff]  ;;  %v903_v6 = vld [vmem:[%s973_s0 + $0x18] sm:$0xff] }
   0x3   :  { %733 = vmatprep.mubr.msk.f32.mxu1 %vm84_vm3, %v80_v2  ;;  %v52_v5 = vsel %vm20_vm4, %v895_v4, 0.0  ;;  %v18_v7 = vld [vmem:[%s973_s0] sm:$0xff]  ;;  %v911_v8 = vld [vmem:[%s973_s0 + $0x8] sm:$0xff] }
   0x4   :  { %784 = vmatprep.subr.msk.bf16.mxu1 %vm783_vm2, %v782_v3  ;;  %53 = vadd.xlane.f32.xlu1 %v52_v5  ;;  %v21_v9 = vsel %vm20_vm4, %v18_v7, 0.0 }
   0x5   :  { %9 = vsyncpa [#allocation3], 0  ;;  %787 = vmatpush3.bf16.msk.msra.mxu1 %vm783_vm2, %v782_v3  ;;  %v81_v10 = vld [vmem:[%s974_s1 + $0x8] sm:$0xff]  ;;  %v55_v11 = vsel %vm20_vm4, %v903_v6, 0.0  ;;  %22 = vadd.xlane.f32.xlu0 %v21_v9  ;;  %v24_v12 = vsel %vm20_vm4, %v911_v8, 0.0  ;;  %v174_v55 = vld [vmem:[%s976_s3 + $0x10] sm:$0xff] }
   0x6   :  { %v175_v56 = vld [vmem:[%s976_s3 + $0x18] sm:$0xff]  ;;  %v172_v58 = vld [vmem:[%s976_s3] sm:$0xff]  ;;  %v173_v59 = vld [vmem:[%s976_s3 + $0x8] sm:$0xff]  ;;  %vm576_vm1 = vcmask 261120   ;;  %s855_s18 = smov [#allocation2]  }
   0x7   :  { %v796_v57 = vpack.c.bf16 %v175_v56, %v174_v55  ;;  %v800_v60 = vpack.c.bf16 %v173_v59, %v172_v58  ;;  %v684_v5 = vld [vmem:[%s976_s3 + $0x28] sm:$0xff]  ;;  %v685_v9 = vld [vmem:[%s976_s3 + $0x30] sm:$0xff]  ;;  %s667_s19 = sshll.u32 %s855_s18, 4  ;;  %s668_s19 = int_to_ptr.vmem [resolvable:$true] %s667_s19 }
   0x8   :  { %734 = vmatmul.mubr.msk.f32.vlgmr.msra.gmra.mrb[0].mxu1 %vm84_vm3, %v81_v10  ;;  %56 = vadd.xlane.f32.xlu1 %v55_v11  ;;  %v686_v10 = vld [vmem:[%s976_s3 + $0x38] sm:$0xff]  ;;  %p835_p1 = scmp.lt.s32.totalorder %s668_s19, %s668_s19 }
   0x9   :  { %25 = vadd.xlane.f32.xlu0 %v24_v12  ;;  %v812_v11 = vpack.c.bf16 %v686_v10, %v685_v9 }
  0x91   :  { %v54_v13 = vpop.xlane.xlu1 %53 }
  0x92   :  { %822 = vrsqrt.f32 %v54_v13  ;;  %v23_v14 = vpop.xlane.xlu0 %22  ;;  %vm60_vm5 = vcmp.eq.f32.partialorder %v54_v13, inf  ;;  %v63_v18 = vand.u32 2147483648, %v54_v13  ;;  %vm62_vm7 = vcmp.eq.f32.partialorder %v54_v13, 0.0 }
  0x93   :  { %824 = vrsqrt.f32 %v23_v14  ;;  %vm29_vm6 = vcmp.eq.f32.partialorder %v23_v14, inf  ;;  %v32_v21 = vand.u32 2147483648, %v23_v14  ;;  %vm31_vm8 = vcmp.eq.f32.partialorder %v23_v14, 0.0 }
  0x95   :  { %v57_v15 = vpop.xlane.xlu1 %56 }
  0x96   :  { %826 = vrsqrt.f32 %v57_v15  ;;  %v26_v16 = vpop.xlane.xlu0 %25  ;;  %vm67_vm9 = vcmp.eq.f32.partialorder %v57_v15, inf  ;;  %vm69_vm10 = vcmp.eq.f32.partialorder %v57_v15, 0.0  ;;  %v70_v25 = vand.u32 2147483648, %v57_v15 }
  0x97   :  { %828 = vrsqrt.f32 %v26_v16  ;;  %vm36_vm11 = vcmp.eq.f32.partialorder %v26_v16, inf  ;;  %v39_v30 = vand.u32 2147483648, %v26_v16  ;;  %vm38_vm12 = vcmp.eq.f32.partialorder %v26_v16, 0.0 }
  0x9c   :  { %v823_v17 = vpop.eup %822 }
  0x9d   :  { %v825_v19 = vpop.eup %824  ;;  %v59_v20 = vmul.f32 %v823_v17, %v54_v13 }
  0x9e   :  { %v28_v22 = vmul.f32 %v825_v19, %v23_v14 }
  0x9f   :  { %v61_v23 = vsel %vm60_vm5, %v54_v13, %v59_v20 }
  0xa0   :  { %v827_v24 = vpop.eup %826  ;;  %v64_v26 = vsel %vm62_vm7, %v63_v18, %v61_v23  ;;  %v30_v27 = vsel %vm29_vm6, %v23_v14, %v28_v22 }
  0xa1   :  { %v829_v28 = vpop.eup %828  ;;  %v66_v29 = vmul.f32 %v827_v24, %v57_v15  ;;  %v72_v31 = vand.u32 2147483647, %v64_v26  ;;  %v33_v32 = vsel %vm31_vm8, %v32_v21, %v30_v27 }
  0xa2   :  { %v35_v33 = vmul.f32 %v829_v28, %v26_v16  ;;  %v41_v34 = vand.u32 2147483647, %v33_v32 }
  0xa3   :  { %v68_v35 = vsel %vm67_vm9, %v57_v15, %v66_v29  ;;  %vm74_vm13 = vcmp.eq.f32.partialorder %v72_v31, inf }
  0xa4   :  { %v37_v36 = vsel %vm36_vm11, %v26_v16, %v35_v33  ;;  %v71_v37 = vsel %vm69_vm10, %v70_v25, %v68_v35  ;;  %v76_v38 = vsel %vm74_vm13, 0.0, %v64_v26  ;;  %vm43_vm14 = vcmp.eq.f32.partialorder %v41_v34, inf }
  0xa5   :  { %v40_v39 = vsel %vm38_vm12, %v39_v30, %v37_v36  ;;  %v73_v40 = vand.u32 2147483647, %v71_v37  ;;  %v45_v41 = vsel %vm43_vm14, 0.0, %v33_v32  ;;  %v78_v44 = vmul.f32 %v895_v4, %v76_v38  ;;  %v683_v4 = vld [vmem:[%s976_s3 + $0x20] sm:$0xff]  ;;  %s830_s3 = scalar_lea.vmem %s668_s19, 256 }
  0xa6   :  { %v42_v42 = vand.u32 2147483647, %v40_v39  ;;  %v47_v43 = vmul.f32 %v45_v41, %v18_v7  ;;  %p831_p0 = scmp.ne.s32.totalorder %s668_s19, %s830_s3  ;;  %p836_p2 = scmp.lt.s32.totalorder %s830_s3, %s830_s3 }
  0xa7   :  { %vm75_vm15 = vcmp.eq.f32.partialorder %v73_v40, inf }
  0xa8   :  { %vm44_vm0 = vcmp.eq.f32.partialorder %v42_v42, inf  ;;  %v77_v45 = vsel %vm75_vm15, 0.0, %v71_v37  ;;  %740 = vmatprep.mubr.msk.f32.mxu1 %vm20_vm4, %v47_v43  ;;  %747 = vmatprep.mubr.msk.f32.mxu0 %vm20_vm4, %v47_v43  ;;  %p837_p3 = por %p836_p2, %p835_p1 }
  0xa9   :  { %v79_v46 = vmul.f32 %v903_v6, %v77_v45  ;;  %v46_v47 = vsel %vm44_vm0, 0.0, %v40_v39 }
  0xaa   :  { %v48_v49 = vmul.f32 %v46_v47, %v911_v8  ;;  %v808_v8 = vpack.c.bf16 %v684_v5, %v683_v4  ;;  %p838_p4 = pnand %p837_p3, %p831_p0 }
  0xab   :  { %v788_v48 = vpack.c.bf16 %v79_v46, %v78_v44 }
  0xad   :  { %789 = vmatprep.subr.bf16.mxu1 %v788_v48 }
  0xae   :  { %791 = vmatpush3.bf16.msra.mxu1 %v788_v48 }
  0xaf   :  { %797 = vmatprep.subr.bf16.mxu1 %v796_v57 }
  0xb1   :  { %741 = vmatmul.mubr.msk.f32.vlgmr.msra.gmra.mrb[2].mxu1 %vm20_vm4, %v48_v49 }
  0xb2   :  { %799 = vmatpush3.bf16.msra.mxu1 %v796_v57 }
  0xb3   :  { %801 = vmatprep.subr.bf16.mxu1 %v800_v60 }
  0xdb   :  { %v735_v50 = vpop.f32.mrb[0].mxu1 }
  0xdc   :  { %v171_v51 = vmax.f32 %v735_v50, 0.0  ;;  %v161_v52 = vpop.f32.mrb[1].mxu1 }
  0xdd   :  { %v170_v53 = vmax.f32 %v161_v52, 0.0 }
  0xdf   :  { %v792_v54 = vpack.c.bf16 %v171_v51, %v170_v53 }
  0xe1   :  { %793 = vmatprep.subr.bf16.mxu0 %v792_v54 }
  0xe2   :  { %795 = vmatpush3.bf16.msra.mxu0 %v792_v54 }
  0xe5   :  { %748 = vmatmul.mubr.msk.f32.vlgmr.msra.gmra.mrb[0].mxu0 %vm20_vm4, %v48_v49 }
  0xe6   :  { %768 = vmatprep.mubr.msk.f32.mxu0 %vm20_vm4, %v47_v43 }
 0x184   :  { %v742_v61 = vpop.f32.mrb[2].mxu1 }
 0x185   :  { %v253_v62 = vpop.f32.mrb[3].mxu1 }
 0x1b8   :  { %v749_v63 = vpop.f32.mrb[0].mxu0 }
 0x1b9   :  { %v328_v0 = vpop.f32.mrb[1].mxu0 }
 0x1ba   :  { %754 = vmatprep.mubr.msk.f32.mxu1 %vm20_vm4, %v328_v0 }
 0x1bb   :  { %755 = vmatmul.mubr.msk.f32.vlgmr.msra.gmra.mrb[4].mxu1 %vm20_vm4, %v749_v63 }
 0x1bc   :  { %803 = vmatpush3.bf16.msra.mxu1 %v800_v60  ;;  %761 = vmatprep.mubr.msk.f32.mxu1 %vm20_vm4, %v253_v62 }
 0x1c3   :  { %762 = vmatmul.mubr.msk.f32.vlgmr.msra.gmra.mrb[4].mxu1 %vm20_vm4, %v742_v61 }
 0x296   :  { %v763_v1 = vpop.f32.mrb[4].mxu1 }
 0x297   :  { %v500_v2 = vmax.f32 %v763_v1, 0.0  ;;  %v490_v3 = vpop.f32.mrb[5].mxu1 }
 0x298   :  { %v499_v6 = vmax.f32 %v490_v3, 0.0 }
 0x29a   :  { %v804_v7 = vpack.c.bf16 %v500_v2, %v499_v6 }
 0x29c   :  { %805 = vmatprep.subr.bf16.mxu0 %v804_v7 }
 0x29d   :  { %807 = vmatpush3.bf16.msra.mxu0 %v804_v7 }
 0x29e   :  { %809 = vmatprep.subr.bf16.mxu0 %v808_v8 }
 0x2a0   :  { %769 = vmatmul.mubr.msk.f32.vlgmr.msra.gmra.mrb[2].mxu0 %vm20_vm4, %v48_v49 }
 0x2a1   :  { %811 = vmatpush3.bf16.msra.mxu0 %v808_v8 }
 0x2a2   :  { %813 = vmatprep.subr.bf16.mxu0 %v812_v11 }
 0x2a5   :  { %815 = vmatpush3.bf16.msra.mxu0 %v812_v11 }
 0x373   :  { %v770_v12 = vpop.f32.mrb[2].mxu0 }
 0x374   :  { %v567_v13 = vpop.f32.mrb[3].mxu0 }
 0x375   :  { %779 = vmatprep.mubr.msk.f32.mxu0 %vm576_vm1, %v567_v13 }
 0x376   :  { %780 = vmatmul.mubr.msk.f32.vlgmr.msra.gmra.mrb[4].mxu0 %vm576_vm1, %v770_v12 }
 0x449   :  { %v781_v14 = vpop.f32.mrb[4].mxu0 }
 0x44a   :  { %v659_v15 = vmax.f32 %v781_v14, 0.0  ;;  %v649_v16 = vpop.f32.mrb[5].mxu0 }
 0x44b   :  { %v658_v17 = vmax.f32 %v649_v16, 0.0 }
 0x44c   :  { %661 = vst [vmem:[#allocation2 + $0x8] sm:$0xff] %v659_v15 }
 0x44d   :  { %660 = vst [vmem:[#allocation2] sm:$0xff] %v658_v17 }
 0x44e   :  { %841 = shalt.err (!%p838_p4)
}
 0x44f   :  { %s842_s22 = scalar_lea.hbm %s977_s4, 256 }
 0x450   :  { %p843_p5 = scmp.ne.s32.totalorder %s977_s4, %s842_s22  ;;  %p846_p6 = scmp.lt.u32.totalorder %s842_s22, %s977_s4 }
 0x452   :  { %p848_p7 = pnand %p846_p6, %p843_p5 }
 0x454   :  { %851 = shalt.err (!%p848_p7)
}
 0x455   :  { %s856_s26 = smov 128   ;;  %s857_s27 = smov 8  }
 0x456   :  { %673 = dma.vmem_to_hbm [thread:$0]  %s668_s19, 256, %s977_s4, [#allocation3], %s856_s26, %s856_s26, %s857_s27  }
 0x457   :  { %852 = dma.done.wait [#allocation3], 256  }
 0x458   :  { %853 = vsyncadd [#allocation3], 4294967040 }
 0x459   :  { %677 = vsyncpa [#allocation3], 1 }

</bundles_post_ra>
